<compile_context>
chip_gen: v5e
topology: v5e:2x2
jax: 0.10.0
libtpu: 0.0.40
codegen_flags: <defaults>
</compile_context>

<pallas_src>
import jax
import jax.numpy as jnp
from jax.experimental import pallas as pl
from jax.experimental.pallas import tpu as pltpu


def mlp_kernel(x_ref, w1_ref, b1_ref, w2_ref, b2_ref, o_ref):
    # Hidden layer: (TILE_B, 784) @ (784, 256) + (1, 256), fp32 accumulation.
    h = jnp.dot(x_ref[...], w1_ref[...], preferred_element_type=jnp.float32)
    h = jnp.maximum(h + b1_ref[...], 0.0)
    # Output layer: (TILE_B, 256) @ (256, 128) + (1, 128) — lane-dense store.
    out = jnp.dot(h.astype(x_ref.dtype), w2_ref[...],
                  preferred_element_type=jnp.float32)
    o_ref[...] = (out + b2_ref[...]).astype(o_ref.dtype)


def mlp_forward(x, w1, b1, w2, b2, *, tile_b=512):
    """x: (B, 784); w1: (784, 256); b1: (256,); w2: (256, 10); b2: (10,)."""
    B, K = x.shape
    H = w1.shape[1]
    N = w2.shape[1]
    N_PAD = 128  # lane-dense output width (padded columns are zero)

    # Zero-pad the second layer to 128 output lanes; biases as (1, cols) rows.
    w2_p = jnp.zeros((H, N_PAD), dtype=w2.dtype).at[:, :N].set(w2)
    b2_p = jnp.zeros((1, N_PAD), dtype=b2.dtype).at[0, :N].set(b2)
    b1_2d = b1.reshape(1, H)

    # Batch tile: multiple of 8 sublanes, capped so double-buffered activation
    # tiles + resident weights stay well inside scoped VMEM on every TPU gen.
    tile_b = min(tile_b, max(8, ((B + 7) // 8) * 8))
    n_tiles = pl.cdiv(B, tile_b)
    b_pad = n_tiles * tile_b
    if b_pad != B:
        x = jnp.pad(x, ((0, b_pad - B), (0, 0)))

    flops = 2 * b_pad * (K * H + H * N_PAD)
    bytes_accessed = (
        x.size * x.dtype.itemsize
        + w1.size * w1.dtype.itemsize
        + w2_p.size * w2_p.dtype.itemsize
        + b1_2d.size * b1_2d.dtype.itemsize
        + b2_p.size * b2_p.dtype.itemsize
        + b_pad * N_PAD * x.dtype.itemsize
    )

    out = pl.pallas_call(
        mlp_kernel,
        out_shape=jax.ShapeDtypeStruct((b_pad, N_PAD), x.dtype),
        grid=(n_tiles,),
        in_specs=[
            pl.BlockSpec((tile_b, K), lambda i: (i, 0)),   # x: streamed per tile
            pl.BlockSpec((K, H), lambda i: (0, 0)),        # W1: resident
            pl.BlockSpec((1, H), lambda i: (0, 0)),        # b1: resident
            pl.BlockSpec((H, N_PAD), lambda i: (0, 0)),    # W2 (padded): resident
            pl.BlockSpec((1, N_PAD), lambda i: (0, 0)),    # b2 (padded): resident
        ],
        out_specs=pl.BlockSpec((tile_b, N_PAD), lambda i: (i, 0)),
        compiler_params=pltpu.CompilerParams(
            dimension_semantics=("parallel",),
        ),
        cost_estimate=pl.CostEstimate(
            flops=flops, transcendentals=0, bytes_accessed=bytes_accessed
        ),
    )(x, w1, b1_2d, w2_p, b2_p)

    # Slice away batch padding and the zero output lanes.
    return out[:B, :N]


if __name__ == "__main__":
    key = jax.random.PRNGKey(0)
    k_x, k_w1, k_b1, k_w2, k_b2 = jax.random.split(key, 5)

    B, D_IN, D_HID, D_OUT = 8, 784, 256, 10

    # PyTorch Linear stores weight as (out, in); transpose to (in, out) for x @ W.
    x = jax.random.normal(k_x, (B, D_IN), dtype=jnp.float32)
    w1_pt = jax.random.normal(k_w1, (D_HID, D_IN), dtype=jnp.float32) * 0.02
    b1 = jax.random.normal(k_b1, (D_HID,), dtype=jnp.float32) * 0.02
    w2_pt = jax.random.normal(k_w2, (D_OUT, D_HID), dtype=jnp.float32) * 0.02
    b2 = jax.random.normal(k_b2, (D_OUT,), dtype=jnp.float32) * 0.02

    w1 = w1_pt.T  # (784, 256)
    w2 = w2_pt.T  # (256, 10)

    out = mlp_forward(x, w1, b1, w2, b2)
    out = jax.block_until_ready(out)

    # Reference check in plain JAX (same math as the PyTorch forward).
    ref = jnp.maximum(x @ w1 + b1, 0.0) @ w2 + b2
    assert out.shape == (B, D_OUT)
    assert jnp.allclose(out, ref, atol=1e-4, rtol=1e-4)

    print("KERNEL_OK")
</pallas_src>

<mosaic_0001>
module attributes {stable_mosaic.version = 11 : i64} {
  func.func @mlp_kernel(%arg0: i32, %arg1: memref<8x784xf32, #tpu.memory_space<vmem>>, %arg2: memref<784x256xf32, #tpu.memory_space<vmem>>, %arg3: memref<1x256xf32, #tpu.memory_space<vmem>>, %arg4: memref<256x128xf32, #tpu.memory_space<vmem>>, %arg5: memref<1x128xf32, #tpu.memory_space<vmem>>, %arg6: memref<8x128xf32, #tpu.memory_space<vmem>>) attributes {dimension_semantics = [#tpu.dimension_semantics<parallel>], iteration_bounds = array<i64: 1>, scalar_prefetch = 0 : i64, scratch_operands = 0 : i64, tpu.core_type = #tpu.core_type<tc>, window_params = [{transform_indices = @transform_0, window_bounds = array<i64: 8, 784>}, {pipeline_mode = #tpu.pipeline_mode<synchronous>, transform_indices = @transform_1, window_bounds = array<i64: 784, 256>}, {pipeline_mode = #tpu.pipeline_mode<synchronous>, transform_indices = @transform_2, window_bounds = array<i64: 1, 256>}, {pipeline_mode = #tpu.pipeline_mode<synchronous>, transform_indices = @transform_3, window_bounds = array<i64: 256, 128>}, {pipeline_mode = #tpu.pipeline_mode<synchronous>, transform_indices = @transform_4, window_bounds = array<i64: 1, 128>}, {transform_indices = @transform_5, window_bounds = array<i64: 8, 128>}]} {
    %c0 = arith.constant 0 : index
    %c0_0 = arith.constant 0 : index
    %0 = vector.load %arg1[%c0, %c0_0] : memref<8x784xf32, #tpu.memory_space<vmem>>, vector<8x784xf32>
    %c0_1 = arith.constant 0 : index
    %c0_2 = arith.constant 0 : index
    %1 = vector.load %arg2[%c0_1, %c0_2] : memref<784x256xf32, #tpu.memory_space<vmem>>, vector<784x256xf32>
    %cst = arith.constant dense<0.000000e+00> : vector<8x256xf32>
    %2 = tpu.matmul %0, %1, %cst {dimension_numbers = #tpu.dot_dimension_numbers<[1], [0], [0], [1], [0, 0, 1, 1], [], []>} : vector<8x784xf32>, vector<784x256xf32>, vector<8x256xf32> -> vector<8x256xf32>
    %c0_3 = arith.constant 0 : index
    %c0_4 = arith.constant 0 : index
    %3 = vector.load %arg3[%c0_3, %c0_4] : memref<1x256xf32, #tpu.memory_space<vmem>>, vector<1x256xf32>
    %4 = vector.broadcast %3 : vector<1x256xf32> to vector<8x256xf32>
    %5 = arith.addf %2, %4 : vector<8x256xf32>
    %cst_5 = arith.constant 0.000000e+00 : f32
    %6 = vector.broadcast %cst_5 : f32 to vector<8x256xf32>
    %7 = arith.maximumf %5, %6 : vector<8x256xf32>
    %c0_6 = arith.constant 0 : index
    %c0_7 = arith.constant 0 : index
    %8 = vector.load %arg4[%c0_6, %c0_7] : memref<256x128xf32, #tpu.memory_space<vmem>>, vector<256x128xf32>
    %cst_8 = arith.constant dense<0.000000e+00> : vector<8x128xf32>
    %9 = tpu.matmul %7, %8, %cst_8 {dimension_numbers = #tpu.dot_dimension_numbers<[1], [0], [0], [1], [0, 0, 1, 1], [], []>} : vector<8x256xf32>, vector<256x128xf32>, vector<8x128xf32> -> vector<8x128xf32>
    %c0_9 = arith.constant 0 : index
    %c0_10 = arith.constant 0 : index
    %10 = vector.load %arg5[%c0_9, %c0_10] : memref<1x128xf32, #tpu.memory_space<vmem>>, vector<1x128xf32>
    %11 = vector.broadcast %10 : vector<1x128xf32> to vector<8x128xf32>
    %12 = arith.addf %9, %11 : vector<8x128xf32>
    %c0_11 = arith.constant 0 : index
    %c0_12 = arith.constant 0 : index
    %13 = vector.load %arg6[%c0_11, %c0_12] : memref<8x128xf32, #tpu.memory_space<vmem>>, vector<8x128xf32>
    tpu.vector_store %arg6[%c0_11, %c0_12], %12 {strides = array<i32>} : memref<8x128xf32, #tpu.memory_space<vmem>>, vector<8x128xf32>,
    return
  }
  func.func @transform_0(%arg0: i32) -> (i32, i32) {
    %c0_i32 = arith.constant 0 : i32
    %c0_i32_0 = arith.constant 0 : i32
    return %arg0, %c0_i32 : i32, i32
  }
  func.func @transform_1(%arg0: i32) -> (i32, i32) {
    %c0_i32 = arith.constant 0 : i32
    %c0_i32_0 = arith.constant 0 : i32
    %c0_i32_1 = arith.constant 0 : i32
    return %c0_i32, %c0_i32_0 : i32, i32
  }
  func.func @transform_2(%arg0: i32) -> (i32, i32) {
    %c0_i32 = arith.constant 0 : i32
    %c0_i32_0 = arith.constant 0 : i32
    %c0_i32_1 = arith.constant 0 : i32
    return %c0_i32, %c0_i32_0 : i32, i32
  }
  func.func @transform_3(%arg0: i32) -> (i32, i32) {
    %c0_i32 = arith.constant 0 : i32
    %c0_i32_0 = arith.constant 0 : i32
    %c0_i32_1 = arith.constant 0 : i32
    return %c0_i32, %c0_i32_0 : i32, i32
  }
  func.func @transform_4(%arg0: i32) -> (i32, i32) {
    %c0_i32 = arith.constant 0 : i32
    %c0_i32_0 = arith.constant 0 : i32
    %c0_i32_1 = arith.constant 0 : i32
    return %c0_i32, %c0_i32_0 : i32, i32
  }
  func.func @transform_5(%arg0: i32) -> (i32, i32) {
    %c0_i32 = arith.constant 0 : i32
    %c0_i32_0 = arith.constant 0 : i32
    return %arg0, %c0_i32 : i32, i32
  }
}

</mosaic_0001>

<bundles_post_ra>
// kernel: tpu_custom_call.1
= control target key start
LH: loop header
LB: loop body
LE: loop exit
PB: predicated region body
PF: predicated region fallthrough
CT: control target
= control target key end

     0   :  { %10 = vsyncpa [#allocation3], 0  ;;  %s898_s0 = inlined_call_operand.hbm [shape: f32[8,784], index: 0, kind: input, shape index: {}]   ;;  %s899_s1 = inlined_call_operand.hbm [shape: f32[784,256], index: 1, kind: input, shape index: {}]   ;;  %s900_s2 = inlined_call_operand.hbm [shape: f32[1,256], index: 2, kind: input, shape index: {}]   ;;  %s901_s3 = inlined_call_operand.hbm [shape: f32[256,128], index: 3, kind: input, shape index: {}]   ;;  %s902_s4 = inlined_call_operand.vmem [shape: f32[1,128], index: 4, kind: input, shape index: {}]   ;;  %s903_s5 = inlined_call_operand.hbm [shape: f32[8,128], index: 5, kind: output, shape index: {}]  }
   0x1   :  { %11 = vsyncpa [#allocation6], 0 }
   0x2   :  { %12 = vsyncpa [#allocation9], 0  ;;  %s29_s20 = sshll.u32 %s899_s1, 4  ;;  %s30_s20 = int_to_ptr.hbm [resolvable:$true] %s29_s20 }
   0x3   :  { %13 = vsyncpa [#allocation4], 0  ;;  %s811_s21 = smov [#allocation5]   ;;  %s19_s25 = sshll.u32 %s898_s0, 4  ;;  %s20_s25 = int_to_ptr.hbm [resolvable:$true] %s19_s25 }
   0x4   :  { %s31_s22 = sshll.u32 %s811_s21, 4  ;;  %s812_s26 = smov 256   ;;  %s32_s22 = int_to_ptr.vmem [resolvable:$true] %s31_s22 }
   0x5   :  { %s813_s27 = smov 16   ;;  %s814_s28 = smov [#allocation2]  }
   0x6   :  { %37 = dma.hbm_to_vmem [thread:$0]  %s30_s20, 25088, %s32_s22, [#allocation6], %s812_s26, %s812_s26, %s813_s27  }
   0x7   :  { %s21_s29 = sshll.u32 %s814_s28, 4  ;;  %s43_s7 = sshll.u32 %s900_s2, 4  ;;  %s22_s29 = int_to_ptr.vmem [resolvable:$true] %s21_s29  ;;  %s44_s7 = int_to_ptr.hbm [resolvable:$true] %s43_s7 }
   0x8   :  { %24 = dma.hbm_to_vmem [thread:$0]  %s20_s25, 896, %s22_s29, [#allocation3]  }
   0x9   :  { %s53_s9 = sshll.u32 %s901_s3, 4  ;;  %s815_s10 = smov [#allocation7]   ;;  %s54_s9 = int_to_ptr.hbm [resolvable:$true] %s53_s9 }
   0xa   :  { %s45_s11 = sshll.u32 %s815_s10, 4  ;;  %s816_s0 = smov [#allocation8]   ;;  %s46_s11 = int_to_ptr.vmem [resolvable:$true] %s45_s11 }
   0xb   :  { %48 = dma.hbm_to_vmem [thread:$0]  %s44_s7, 32, %s46_s11, [#allocation6]  }
   0xc   :  { %s55_s12 = sshll.u32 %s816_s0, 4  ;;  %s817_s13 = smov 128   ;;  %s56_s12 = int_to_ptr.vmem [resolvable:$true] %s55_s12 }
   0xd   :  { %s818_s14 = smov 8  }
   0xe   :  { %61 = dma.hbm_to_vmem [thread:$0]  %s54_s9, 4096, %s56_s12, [#allocation9], %s817_s13, %s817_s13, %s818_s14  }
   0xf   :  { %803 = dma.done.wait [#allocation3], 896  }
  0x10   :  { %804 = vsyncadd [#allocation3], 4294966400 }
  0x11   :  { %805 = dma.done.wait [#allocation6], 25120  }
  0x12   :  { %806 = vsyncadd [#allocation6], 4294942176 }
  0x13   :  { %807 = dma.done.wait [#allocation9], 4096  }
  0x14   :  { %808 = vsyncadd [#allocation9], 4294963200  ;;  %v117_v0 = vld [vmem:[#allocation5 + $0xf0] sm:$0xff]  ;;  %v115_v3 = vld [vmem:[#allocation5 + $0xe0] sm:$0xff]  ;;  %vm289_vm0 = vcmask 130048   ;;  %s819_s15 = smov [#allocation10]  }
  0x15   :  { %v181_v1 = vld [vmem:[#allocation5 + $0x2f0] sm:$0xff]  ;;  %293 = vmatpush.msra.mxu0 %v117_v0  ;;  %v179_v5 = vld [vmem:[#allocation5 + $0x2e0] sm:$0xff]  ;;  %s657_s16 = sshll.u32 %s819_s15, 4  ;;  %s659_s19 = sshll.u32 %s903_s5, 4  ;;  %s658_s16 = int_to_ptr.vmem [resolvable:$true] %s657_s16  ;;  %s660_s19 = int_to_ptr.hbm [resolvable:$true] %s659_s19 }
  0x16   :  { %v213_v2 = vld [vmem:[#allocation5 + $0x3f0] sm:$0xff]  ;;  %333 = vmatpush.msra.mxu2 %v181_v1  ;;  %v211_v6 = vld [vmem:[#allocation5 + $0x3e0] sm:$0xff] }
  0x17   :  { %v149_v4 = vld [vmem:[#allocation5 + $0x1f0] sm:$0xff]  ;;  %353 = vmatpush.msra.mxu3 %v213_v2  ;;  %v147_v8 = vld [vmem:[#allocation5 + $0x1e0] sm:$0xff]  ;;  %294 = vmatpush.msra.mxu0 %v115_v3  ;;  %v118_v2 = vld [vmem:[#allocation5 + $0xf8] sm:$0xff] }
  0x18   :  { %313 = vmatpush.msra.mxu1 %v149_v4  ;;  %v113_v7 = vld [vmem:[#allocation5 + $0xd0] sm:$0xff]  ;;  %334 = vmatpush.msra.mxu2 %v179_v5  ;;  %v111_v11 = vld [vmem:[#allocation5 + $0xc0] sm:$0xff] }
  0x19   :  { %v177_v9 = vld [vmem:[#allocation5 + $0x2d0] sm:$0xff]  ;;  %354 = vmatpush.msra.mxu3 %v211_v6  ;;  %v175_v13 = vld [vmem:[#allocation5 + $0x2c0] sm:$0xff]  ;;  %295 = vmatpush.msra.mxu0 %v113_v7  ;;  %v862_v6 = vld [vmem:[#allocation2 + $0x10] sm:$0xff] }
  0x1a   :  { %v209_v10 = vld [vmem:[#allocation5 + $0x3d0] sm:$0xff]  ;;  %314 = vmatpush.msra.mxu1 %v147_v8  ;;  %335 = vmatpush.msra.mxu2 %v177_v9  ;;  %v207_v14 = vld [vmem:[#allocation5 + $0x3c0] sm:$0xff]  ;;  %v116_v7 = vld [vmem:[#allocation5 + $0xe8] sm:$0xff] }
  0x1b   :  { %v145_v12 = vld [vmem:[#allocation5 + $0x1d0] sm:$0xff]  ;;  %v143_v15 = vld [vmem:[#allocation5 + $0x1c0] sm:$0xff]  ;;  %355 = vmatpush.msra.mxu3 %v209_v10  ;;  %296 = vmatpush.msra.mxu0 %v111_v11  ;;  %v150_v8 = vld [vmem:[#allocation5 + $0x1f8] sm:$0xff] }
  0x1c   :  { %315 = vmatpush.msra.mxu1 %v145_v12  ;;  %v109_v16 = vld [vmem:[#allocation5 + $0xb0] sm:$0xff]  ;;  %336 = vmatpush.msra.mxu2 %v175_v13  ;;  %v107_v20 = vld [vmem:[#allocation5 + $0xa0] sm:$0xff]  ;;  %v864_v11 = vld [vmem:[#allocation2] sm:$0xff] }
  0x1d   :  { %v173_v17 = vld [vmem:[#allocation5 + $0x2b0] sm:$0xff]  ;;  %356 = vmatpush.msra.mxu3 %v207_v14  ;;  %v171_v21 = vld [vmem:[#allocation5 + $0x2a0] sm:$0xff]  ;;  %297 = vmatpush.msra.mxu0 %v109_v16  ;;  %v148_v13 = vld [vmem:[#allocation5 + $0x1e8] sm:$0xff] }
  0x1e   :  { %v205_v18 = vld [vmem:[#allocation5 + $0x3b0] sm:$0xff]  ;;  %316 = vmatpush.msra.mxu1 %v143_v15  ;;  %337 = vmatpush.msra.mxu2 %v173_v17  ;;  %v203_v22 = vld [vmem:[#allocation5 + $0x3a0] sm:$0xff]  ;;  %v114_v14 = vld [vmem:[#allocation5 + $0xd8] sm:$0xff] }
  0x1f   :  { %v141_v19 = vld [vmem:[#allocation5 + $0x1b0] sm:$0xff]  ;;  %v139_v23 = vld [vmem:[#allocation5 + $0x1a0] sm:$0xff]  ;;  %357 = vmatpush.msra.mxu3 %v205_v18  ;;  %298 = vmatpush.msra.mxu0 %v107_v20  ;;  %v146_v17 = vld [vmem:[#allocation5 + $0x1d8] sm:$0xff] }
  0x20   :  { %317 = vmatpush.msra.mxu1 %v141_v19  ;;  %v105_v24 = vld [vmem:[#allocation5 + $0x90] sm:$0xff]  ;;  %338 = vmatpush.msra.mxu2 %v171_v21  ;;  %v103_v28 = vld [vmem:[#allocation5 + $0x80] sm:$0xff]  ;;  %v112_v19 = vld [vmem:[#allocation5 + $0xc8] sm:$0xff] }
  0x21   :  { %v169_v25 = vld [vmem:[#allocation5 + $0x290] sm:$0xff]  ;;  %358 = vmatpush.msra.mxu3 %v203_v22  ;;  %v167_v29 = vld [vmem:[#allocation5 + $0x280] sm:$0xff]  ;;  %299 = vmatpush.msra.mxu0 %v105_v24  ;;  %v110_v22 = vld [vmem:[#allocation5 + $0xb8] sm:$0xff] }
  0x22   :  { %v201_v26 = vld [vmem:[#allocation5 + $0x390] sm:$0xff]  ;;  %318 = vmatpush.msra.mxu1 %v139_v23  ;;  %339 = vmatpush.msra.mxu2 %v169_v25  ;;  %v199_v30 = vld [vmem:[#allocation5 + $0x380] sm:$0xff]  ;;  %v144_v23 = vld [vmem:[#allocation5 + $0x1c8] sm:$0xff] }
  0x23   :  { %v137_v27 = vld [vmem:[#allocation5 + $0x190] sm:$0xff]  ;;  %v135_v31 = vld [vmem:[#allocation5 + $0x180] sm:$0xff]  ;;  %359 = vmatpush.msra.mxu3 %v201_v26  ;;  %300 = vmatpush.msra.mxu0 %v103_v28  ;;  %v108_v26 = vld [vmem:[#allocation5 + $0xa8] sm:$0xff] }
  0x24   :  { %319 = vmatpush.msra.mxu1 %v137_v27  ;;  %v101_v32 = vld [vmem:[#allocation5 + $0x70] sm:$0xff]  ;;  %340 = vmatpush.msra.mxu2 %v167_v29  ;;  %v99_v36 = vld [vmem:[#allocation5 + $0x60] sm:$0xff]  ;;  %v142_v27 = vld [vmem:[#allocation5 + $0x1b8] sm:$0xff] }
  0x25   :  { %v165_v33 = vld [vmem:[#allocation5 + $0x270] sm:$0xff]  ;;  %360 = vmatpush.msra.mxu3 %v199_v30  ;;  %v163_v37 = vld [vmem:[#allocation5 + $0x260] sm:$0xff]  ;;  %301 = vmatpush.msra.mxu0 %v101_v32  ;;  %v106_v30 = vld [vmem:[#allocation5 + $0x98] sm:$0xff] }
  0x26   :  { %v197_v34 = vld [vmem:[#allocation5 + $0x370] sm:$0xff]  ;;  %320 = vmatpush.msra.mxu1 %v135_v31  ;;  %341 = vmatpush.msra.mxu2 %v165_v33  ;;  %v195_v38 = vld [vmem:[#allocation5 + $0x360] sm:$0xff]  ;;  %v140_v31 = vld [vmem:[#allocation5 + $0x1a8] sm:$0xff] }
  0x27   :  { %v133_v35 = vld [vmem:[#allocation5 + $0x170] sm:$0xff]  ;;  %v131_v39 = vld [vmem:[#allocation5 + $0x160] sm:$0xff]  ;;  %361 = vmatpush.msra.mxu3 %v197_v34  ;;  %302 = vmatpush.msra.mxu0 %v99_v36  ;;  %v104_v34 = vld [vmem:[#allocation5 + $0x88] sm:$0xff] }
  0x28   :  { %321 = vmatpush.msra.mxu1 %v133_v35  ;;  %v97_v40 = vld [vmem:[#allocation5 + $0x50] sm:$0xff]  ;;  %342 = vmatpush.msra.mxu2 %v163_v37  ;;  %v95_v44 = vld [vmem:[#allocation5 + $0x40] sm:$0xff]  ;;  %v138_v35 = vld [vmem:[#allocation5 + $0x198] sm:$0xff] }
  0x29   :  { %v161_v41 = vld [vmem:[#allocation5 + $0x250] sm:$0xff]  ;;  %362 = vmatpush.msra.mxu3 %v195_v38  ;;  %v159_v45 = vld [vmem:[#allocation5 + $0x240] sm:$0xff]  ;;  %303 = vmatpush.msra.mxu0 %v97_v40  ;;  %v102_v38 = vld [vmem:[#allocation5 + $0x78] sm:$0xff] }
  0x2a   :  { %v193_v42 = vld [vmem:[#allocation5 + $0x350] sm:$0xff]  ;;  %322 = vmatpush.msra.mxu1 %v131_v39  ;;  %343 = vmatpush.msra.mxu2 %v161_v41  ;;  %v191_v46 = vld [vmem:[#allocation5 + $0x340] sm:$0xff]  ;;  %v136_v39 = vld [vmem:[#allocation5 + $0x188] sm:$0xff] }
  0x2b   :  { %v129_v43 = vld [vmem:[#allocation5 + $0x150] sm:$0xff]  ;;  %v127_v47 = vld [vmem:[#allocation5 + $0x140] sm:$0xff]  ;;  %363 = vmatpush.msra.mxu3 %v193_v42  ;;  %304 = vmatpush.msra.mxu0 %v95_v44  ;;  %v100_v42 = vld [vmem:[#allocation5 + $0x68] sm:$0xff] }
  0x2c   :  { %323 = vmatpush.msra.mxu1 %v129_v43  ;;  %v93_v48 = vld [vmem:[#allocation5 + $0x30] sm:$0xff]  ;;  %344 = vmatpush.msra.mxu2 %v159_v45  ;;  %v91_v52 = vld [vmem:[#allocation5 + $0x20] sm:$0xff]  ;;  %v134_v43 = vld [vmem:[#allocation5 + $0x178] sm:$0xff] }
  0x2d   :  { %v157_v49 = vld [vmem:[#allocation5 + $0x230] sm:$0xff]  ;;  %364 = vmatpush.msra.mxu3 %v191_v46  ;;  %v155_v53 = vld [vmem:[#allocation5 + $0x220] sm:$0xff]  ;;  %305 = vmatpush.msra.mxu0 %v93_v48  ;;  %v98_v46 = vld [vmem:[#allocation5 + $0x58] sm:$0xff] }
  0x2e   :  { %v189_v50 = vld [vmem:[#allocation5 + $0x330] sm:$0xff]  ;;  %324 = vmatpush.msra.mxu1 %v127_v47  ;;  %345 = vmatpush.msra.mxu2 %v157_v49  ;;  %v187_v54 = vld [vmem:[#allocation5 + $0x320] sm:$0xff]  ;;  %v132_v47 = vld [vmem:[#allocation5 + $0x168] sm:$0xff] }
  0x2f   :  { %v125_v51 = vld [vmem:[#allocation5 + $0x130] sm:$0xff]  ;;  %v123_v55 = vld [vmem:[#allocation5 + $0x120] sm:$0xff]  ;;  %365 = vmatpush.msra.mxu3 %v189_v50  ;;  %306 = vmatpush.msra.mxu0 %v91_v52  ;;  %v96_v50 = vld [vmem:[#allocation5 + $0x48] sm:$0xff] }
  0x30   :  { %325 = vmatpush.msra.mxu1 %v125_v51  ;;  %v89_v56 = vld [vmem:[#allocation5 + $0x10] sm:$0xff]  ;;  %346 = vmatpush.msra.mxu2 %v155_v53  ;;  %v87_v60 = vld [vmem:[#allocation5] sm:$0xff]  ;;  %v130_v51 = vld [vmem:[#allocation5 + $0x158] sm:$0xff] }
  0x31   :  { %v153_v57 = vld [vmem:[#allocation5 + $0x210] sm:$0xff]  ;;  %366 = vmatpush.msra.mxu3 %v187_v54  ;;  %v151_v61 = vld [vmem:[#allocation5 + $0x200] sm:$0xff]  ;;  %307 = vmatpush.msra.mxu0 %v89_v56  ;;  %v94_v54 = vld [vmem:[#allocation5 + $0x38] sm:$0xff] }
  0x32   :  { %v185_v58 = vld [vmem:[#allocation5 + $0x310] sm:$0xff]  ;;  %326 = vmatpush.msra.mxu1 %v123_v55  ;;  %347 = vmatpush.msra.mxu2 %v153_v57  ;;  %v183_v62 = vld [vmem:[#allocation5 + $0x300] sm:$0xff]  ;;  %v128_v55 = vld [vmem:[#allocation5 + $0x148] sm:$0xff] }
  0x33   :  { %v121_v59 = vld [vmem:[#allocation5 + $0x110] sm:$0xff]  ;;  %367 = vmatpush.msra.mxu3 %v185_v58  ;;  %v119_v1 = vld [vmem:[#allocation5 + $0x100] sm:$0xff]  ;;  %308 = vmatpush.msra.mxu0 %v87_v60  ;;  %v92_v58 = vld [vmem:[#allocation5 + $0x28] sm:$0xff] }
  0x34   :  { %v245_v63 = vld [vmem:[#allocation5 + $0x4f0] sm:$0xff]  ;;  %327 = vmatpush.msra.mxu1 %v121_v59  ;;  %348 = vmatpush.msra.mxu2 %v151_v61  ;;  %v243_v3 = vld [vmem:[#allocation5 + $0x4e0] sm:$0xff]  ;;  %v126_v59 = vld [vmem:[#allocation5 + $0x138] sm:$0xff] }
  0x35   :  { %v281_v0 = vld [vmem:[#allocation5 + $0x610] sm:$0xff]  ;;  %368 = vmatpush.msra.mxu3 %v183_v62  ;;  %373 = vmatpush.msrb.mxu0 %v245_v63  ;;  %v279_v5 = vld [vmem:[#allocation5 + $0x600] sm:$0xff]  ;;  %v874_v62 = vld [vmem:[#allocation2 + $0x30] sm:$0xff] }
  0x36   :  { %v277_v4 = vld [vmem:[#allocation5 + $0x5f0] sm:$0xff]  ;;  %427 = vmatpush.msrb.mxu2 %v281_v0  ;;  %328 = vmatpush.msra.mxu1 %v119_v1  ;;  %v275_v10 = vld [vmem:[#allocation5 + $0x5e0] sm:$0xff]  ;;  %v90_v63 = vld [vmem:[#allocation5 + $0x18] sm:$0xff] }
  0x37   :  { %433 = vmatpush.msrb.mxu3 %v118_v2  ;;  %374 = vmatpush.msrb.mxu0 %v243_v3  ;;  %v241_v9 = vld [vmem:[#allocation5 + $0x4d0] sm:$0xff]  ;;  %v867_v12 = vld [vmem:[#allocation2 + $0x18] sm:$0xff]  ;;  %v124_v0 = vld [vmem:[#allocation5 + $0x128] sm:$0xff] }
  0x38   :  { %393 = vmatpush.msrb.mxu1 %v277_v4  ;;  %428 = vmatpush.msrb.mxu2 %v279_v5  ;;  %v239_v15 = vld [vmem:[#allocation5 + $0x4c0] sm:$0xff]  ;;  %v273_v16 = vld [vmem:[#allocation5 + $0x5d0] sm:$0xff]  ;;  %v876_v3 = vld [vmem:[#allocation2 + $0x20] sm:$0xff] }
  0x39   :  { %349 = vmatmul.f32.vlgmr.msra.gmra.mxu2 %v862_v6  ;;  %434 = vmatpush.msrb.mxu3 %v116_v7  ;;  %v871_v18 = vld [vmem:[#allocation2 + $0x8] sm:$0xff]  ;;  %v271_v21 = vld [vmem:[#allocation5 + $0x5c0] sm:$0xff]  ;;  %v88_v4 = vld [vmem:[#allocation5 + $0x8] sm:$0xff] }
  0x3a   :  { %453 = vmatpush.msra.mxu2 %v150_v8  ;;  %375 = vmatpush.msrb.mxu0 %v241_v9  ;;  %v237_v20 = vld [vmem:[#allocation5 + $0x4b0] sm:$0xff]  ;;  %v235_v24 = vld [vmem:[#allocation5 + $0x4a0] sm:$0xff]  ;;  %v122_v5 = vld [vmem:[#allocation5 + $0x118] sm:$0xff] }
  0x3b   :  { %394 = vmatpush.msrb.mxu1 %v275_v10  ;;  %309 = vmatmul.f32.vlgmr.msra.gmra.mxu0 %v864_v11  ;;  %v269_v25 = vld [vmem:[#allocation5 + $0x5b0] sm:$0xff]  ;;  %v267_v29 = vld [vmem:[#allocation5 + $0x5a0] sm:$0xff]  ;;  %v246_v8 = vld [vmem:[#allocation5 + $0x4f8] sm:$0xff] }
  0x3c   :  { %369 = vmatmul.f32.vlgmr.msra.gmra.mxu3 %v867_v12  ;;  %454 = vmatpush.msra.mxu2 %v148_v13  ;;  %v233_v28 = vld [vmem:[#allocation5 + $0x490] sm:$0xff]  ;;  %v231_v32 = vld [vmem:[#allocation5 + $0x480] sm:$0xff]  ;;  %v120_v10 = vld [vmem:[#allocation5 + $0x108] sm:$0xff] }
  0x3d   :  { %435 = vmatpush.msrb.mxu3 %v114_v14  ;;  %376 = vmatpush.msrb.mxu0 %v239_v15  ;;  %v265_v33 = vld [vmem:[#allocation5 + $0x590] sm:$0xff]  ;;  %v263_v37 = vld [vmem:[#allocation5 + $0x580] sm:$0xff]  ;;  %v182_v13 = vld [vmem:[#allocation5 + $0x2f8] sm:$0xff] }
  0x3e   :  { %395 = vmatpush.msrb.mxu1 %v273_v16  ;;  %455 = vmatpush.msra.mxu2 %v146_v17  ;;  %v229_v36 = vld [vmem:[#allocation5 + $0x470] sm:$0xff]  ;;  %v227_v40 = vld [vmem:[#allocation5 + $0x460] sm:$0xff]  ;;  %v244_v14 = vld [vmem:[#allocation5 + $0x4e8] sm:$0xff] }
  0x3f   :  { %329 = vmatmul.f32.vlgmr.msra.gmra.mxu1 %v871_v18  ;;  %436 = vmatpush.msrb.mxu3 %v112_v19  ;;  %v261_v41 = vld [vmem:[#allocation5 + $0x570] sm:$0xff]  ;;  %v259_v45 = vld [vmem:[#allocation5 + $0x560] sm:$0xff]  ;;  %v278_v15 = vld [vmem:[#allocation5 + $0x5f8] sm:$0xff] }
  0x40   :  { %377 = vmatpush.msrb.mxu0 %v237_v20  ;;  %396 = vmatpush.msrb.mxu1 %v271_v21  ;;  %v225_v44 = vld [vmem:[#allocation5 + $0x450] sm:$0xff]  ;;  %v223_v48 = vld [vmem:[#allocation5 + $0x440] sm:$0xff]  ;;  %v214_v16 = vld [vmem:[#allocation5 + $0x3f8] sm:$0xff] }
  0x41   :  { %437 = vmatpush.msrb.mxu3 %v110_v22  ;;  %456 = vmatpush.msra.mxu2 %v144_v23  ;;  %v257_v49 = vld [vmem:[#allocation5 + $0x550] sm:$0xff]  ;;  %v255_v53 = vld [vmem:[#allocation5 + $0x540] sm:$0xff]  ;;  %v180_v17 = vld [vmem:[#allocation5 + $0x2e8] sm:$0xff] }
  0x42   :  { %378 = vmatpush.msrb.mxu0 %v235_v24  ;;  %397 = vmatpush.msrb.mxu1 %v269_v25  ;;  %v221_v52 = vld [vmem:[#allocation5 + $0x430] sm:$0xff]  ;;  %v219_v56 = vld [vmem:[#allocation5 + $0x420] sm:$0xff]  ;;  %v242_v19 = vld [vmem:[#allocation5 + $0x4d8] sm:$0xff] }
  0x43   :  { %438 = vmatpush.msrb.mxu3 %v108_v26  ;;  %457 = vmatpush.msra.mxu2 %v142_v27  ;;  %v253_v57 = vld [vmem:[#allocation5 + $0x530] sm:$0xff]  ;;  %v251_v61 = vld [vmem:[#allocation5 + $0x520] sm:$0xff]  ;;  %v276_v20 = vld [vmem:[#allocation5 + $0x5e8] sm:$0xff] }
  0x44   :  { %379 = vmatpush.msrb.mxu0 %v233_v28  ;;  %398 = vmatpush.msrb.mxu1 %v267_v29  ;;  %v217_v60 = vld [vmem:[#allocation5 + $0x410] sm:$0xff]  ;;  %v215_v1 = vld [vmem:[#allocation5 + $0x400] sm:$0xff]  ;;  %v212_v21 = vld [vmem:[#allocation5 + $0x3e8] sm:$0xff] }
  0x45   :  { %439 = vmatpush.msrb.mxu3 %v106_v30  ;;  %458 = vmatpush.msra.mxu2 %v140_v31  ;;  %v249_v2 = vld [vmem:[#allocation5 + $0x510] sm:$0xff]  ;;  %v247_v7 = vld [vmem:[#allocation5 + $0x500] sm:$0xff]  ;;  %v178_v22 = vld [vmem:[#allocation5 + $0x2d8] sm:$0xff] }
  0x46   :  { %380 = vmatpush.msrb.mxu0 %v231_v32  ;;  %399 = vmatpush.msrb.mxu1 %v265_v33  ;;  %v881_v9 = vld [vmem:[#allocation2 + $0x28] sm:$0xff]  ;;  %v240_v23 = vld [vmem:[#allocation5 + $0x4c8] sm:$0xff]  ;;  %v274_v24 = vld [vmem:[#allocation5 + $0x5d8] sm:$0xff] }
  0x47   :  { %440 = vmatpush.msrb.mxu3 %v104_v34  ;;  %459 = vmatpush.msra.mxu2 %v138_v35  ;;  %v210_v25 = vld [vmem:[#allocation5 + $0x3d8] sm:$0xff]  ;;  %v176_v26 = vld [vmem:[#allocation5 + $0x2c8] sm:$0xff] }
  0x48   :  { %381 = vmatpush.msrb.mxu0 %v229_v36  ;;  %400 = vmatpush.msrb.mxu1 %v263_v37  ;;  %v238_v27 = vld [vmem:[#allocation5 + $0x4b8] sm:$0xff]  ;;  %v272_v28 = vld [vmem:[#allocation5 + $0x5c8] sm:$0xff] }
  0x49   :  { %441 = vmatpush.msrb.mxu3 %v102_v38  ;;  %460 = vmatpush.msra.mxu2 %v136_v39  ;;  %v208_v29 = vld [vmem:[#allocation5 + $0x3c8] sm:$0xff]  ;;  %v174_v30 = vld [vmem:[#allocation5 + $0x2b8] sm:$0xff] }
  0x4a   :  { %382 = vmatpush.msrb.mxu0 %v227_v40  ;;  %401 = vmatpush.msrb.mxu1 %v261_v41  ;;  %v236_v31 = vld [vmem:[#allocation5 + $0x4a8] sm:$0xff]  ;;  %v270_v32 = vld [vmem:[#allocation5 + $0x5b8] sm:$0xff] }
  0x4b   :  { %442 = vmatpush.msrb.mxu3 %v100_v42  ;;  %461 = vmatpush.msra.mxu2 %v134_v43  ;;  %v206_v33 = vld [vmem:[#allocation5 + $0x3b8] sm:$0xff]  ;;  %v172_v34 = vld [vmem:[#allocation5 + $0x2a8] sm:$0xff] }
  0x4c   :  { %383 = vmatpush.msrb.mxu0 %v225_v44  ;;  %402 = vmatpush.msrb.mxu1 %v259_v45  ;;  %v234_v35 = vld [vmem:[#allocation5 + $0x498] sm:$0xff]  ;;  %v268_v36 = vld [vmem:[#allocation5 + $0x5a8] sm:$0xff] }
  0x4d   :  { %443 = vmatpush.msrb.mxu3 %v98_v46  ;;  %462 = vmatpush.msra.mxu2 %v132_v47  ;;  %v204_v37 = vld [vmem:[#allocation5 + $0x3a8] sm:$0xff]  ;;  %v170_v38 = vld [vmem:[#allocation5 + $0x298] sm:$0xff] }
  0x4e   :  { %384 = vmatpush.msrb.mxu0 %v223_v48  ;;  %403 = vmatpush.msrb.mxu1 %v257_v49  ;;  %v232_v39 = vld [vmem:[#allocation5 + $0x488] sm:$0xff]  ;;  %v266_v40 = vld [vmem:[#allocation5 + $0x598] sm:$0xff] }
  0x4f   :  { %444 = vmatpush.msrb.mxu3 %v96_v50  ;;  %463 = vmatpush.msra.mxu2 %v130_v51  ;;  %v202_v41 = vld [vmem:[#allocation5 + $0x398] sm:$0xff]  ;;  %v168_v42 = vld [vmem:[#allocation5 + $0x288] sm:$0xff] }
  0x50   :  { %385 = vmatpush.msrb.mxu0 %v221_v52  ;;  %404 = vmatpush.msrb.mxu1 %v255_v53  ;;  %v230_v43 = vld [vmem:[#allocation5 + $0x478] sm:$0xff]  ;;  %v264_v44 = vld [vmem:[#allocation5 + $0x588] sm:$0xff] }
  0x51   :  { %445 = vmatpush.msrb.mxu3 %v94_v54  ;;  %464 = vmatpush.msra.mxu2 %v128_v55  ;;  %v200_v45 = vld [vmem:[#allocation5 + $0x388] sm:$0xff]  ;;  %v166_v46 = vld [vmem:[#allocation5 + $0x278] sm:$0xff] }
  0x52   :  { %386 = vmatpush.msrb.mxu0 %v219_v56  ;;  %405 = vmatpush.msrb.mxu1 %v253_v57  ;;  %v228_v47 = vld [vmem:[#allocation5 + $0x468] sm:$0xff]  ;;  %v262_v48 = vld [vmem:[#allocation5 + $0x578] sm:$0xff] }
  0x53   :  { %446 = vmatpush.msrb.mxu3 %v92_v58  ;;  %465 = vmatpush.msra.mxu2 %v126_v59  ;;  %v198_v49 = vld [vmem:[#allocation5 + $0x378] sm:$0xff]  ;;  %v164_v50 = vld [vmem:[#allocation5 + $0x268] sm:$0xff] }
  0x54   :  { %387 = vmatpush.msrb.mxu0 %v217_v60  ;;  %406 = vmatpush.msrb.mxu1 %v251_v61  ;;  %v226_v51 = vld [vmem:[#allocation5 + $0x458] sm:$0xff]  ;;  %v260_v52 = vld [vmem:[#allocation5 + $0x568] sm:$0xff] }
  0x55   :  { %671 = vmatmul.msk.f32.vlgmr.msrb.gmra.mxu2 %vm289_vm0, %v874_v62  ;;  %447 = vmatpush.msrb.mxu3 %v90_v63  ;;  %v196_v53 = vld [vmem:[#allocation5 + $0x368] sm:$0xff]  ;;  %v162_v54 = vld [vmem:[#allocation5 + $0x258] sm:$0xff] }
  0x56   :  { %466 = vmatpush.msra.mxu2 %v124_v0  ;;  %388 = vmatpush.msrb.mxu0 %v215_v1  ;;  %v224_v55 = vld [vmem:[#allocation5 + $0x448] sm:$0xff]  ;;  %v258_v56 = vld [vmem:[#allocation5 + $0x558] sm:$0xff] }
  0x57   :  { %407 = vmatpush.msrb.mxu1 %v249_v2  ;;  %389 = vmatmul.f32.vlgmr.msrb.gmra.mxu0 %v876_v3  ;;  %v160_v57 = vld [vmem:[#allocation5 + $0x248] sm:$0xff]  ;;  %v194_v58 = vld [vmem:[#allocation5 + $0x358] sm:$0xff] }
  0x58   :  { %448 = vmatpush.msrb.mxu3 %v88_v4  ;;  %467 = vmatpush.msra.mxu2 %v122_v5  ;;  %v222_v59 = vld [vmem:[#allocation5 + $0x438] sm:$0xff]  ;;  %v256_v60 = vld [vmem:[#allocation5 + $0x548] sm:$0xff] }
  0x59   :  { %408 = vmatpush.msrb.mxu1 %v247_v7  ;;  %473 = vmatpush.msra.mxu0 %v182_v13  ;;  %v158_v61 = vld [vmem:[#allocation5 + $0x238] sm:$0xff]  ;;  %v192_v63 = vld [vmem:[#allocation5 + $0x348] sm:$0xff] }
  0x5a   :  { %513 = vmatpush.msra.mxu3 %v246_v8  ;;  %409 = vmatmul.f32.vlgmr.msrb.gmra.mxu1 %v881_v9  ;;  %v220_v0 = vld [vmem:[#allocation5 + $0x428] sm:$0xff]  ;;  %v254_v1 = vld [vmem:[#allocation5 + $0x538] sm:$0xff] }
  0x5b   :  { %468 = vmatpush.msra.mxu2 %v120_v10  ;;  %493 = vmatpush.msra.mxu1 %v214_v16  ;;  %v156_v2 = vld [vmem:[#allocation5 + $0x228] sm:$0xff]  ;;  %v190_v4 = vld [vmem:[#allocation5 + $0x338] sm:$0xff] }
  0x5c   :  { %514 = vmatpush.msra.mxu3 %v244_v14  ;;  %474 = vmatpush.msra.mxu0 %v180_v17  ;;  %v218_v5 = vld [vmem:[#allocation5 + $0x418] sm:$0xff]  ;;  %v252_v7 = vld [vmem:[#allocation5 + $0x528] sm:$0xff] }
  0x5d   :  { %533 = vmatpush.msrb.mxu2 %v278_v15  ;;  %494 = vmatpush.msra.mxu1 %v212_v21  ;;  %v154_v8 = vld [vmem:[#allocation5 + $0x218] sm:$0xff]  ;;  %v216_v10 = vld [vmem:[#allocation5 + $0x408] sm:$0xff] }
  0x5e   :  { %515 = vmatpush.msra.mxu3 %v242_v19  ;;  %475 = vmatpush.msra.mxu0 %v178_v22  ;;  %v250_v13 = vld [vmem:[#allocation5 + $0x518] sm:$0xff]  ;;  %v152_v14 = vld [vmem:[#allocation5 + $0x208] sm:$0xff] }
  0x5f   :  { %534 = vmatpush.msrb.mxu2 %v276_v20  ;;  %495 = vmatpush.msra.mxu1 %v210_v25  ;;  %v186_v15 = vld [vmem:[#allocation5 + $0x318] sm:$0xff]  ;;  %v184_v17 = vld [vmem:[#allocation5 + $0x308] sm:$0xff] }
  0x60   :  { %516 = vmatpush.msra.mxu3 %v240_v23  ;;  %476 = vmatpush.msra.mxu0 %v176_v26  ;;  %v282_v16 = vld [vmem:[#allocation5 + $0x618] sm:$0xff]  ;;  %v280_v19 = vld [vmem:[#allocation5 + $0x608] sm:$0xff] }
  0x61   :  { %535 = vmatpush.msrb.mxu2 %v274_v24  ;;  %496 = vmatpush.msra.mxu1 %v208_v29  ;;  %v590_v20 = vld [vmem:[#allocation8 + $0x78] sm:$0xff]  ;;  %v588_v21 = vld [vmem:[#allocation8 + $0x68] sm:$0xff]  ;;  %v587_v22 = vld [vmem:[#allocation8 + $0x60] sm:$0xff] }
  0x62   :  { %517 = vmatpush.msra.mxu3 %v238_v27  ;;  %477 = vmatpush.msra.mxu0 %v174_v30  ;;  %v586_v23 = vld [vmem:[#allocation8 + $0x58] sm:$0xff]  ;;  %v583_v24 = vld [vmem:[#allocation8 + $0x40] sm:$0xff]  ;;  %v581_v25 = vld [vmem:[#allocation8 + $0x30] sm:$0xff] }
  0x63   :  { %536 = vmatpush.msrb.mxu2 %v272_v28  ;;  %497 = vmatpush.msra.mxu1 %v206_v33  ;;  %v579_v26 = vld [vmem:[#allocation8 + $0x20] sm:$0xff]  ;;  %v578_v27 = vld [vmem:[#allocation8 + $0x18] sm:$0xff]  ;;  %v577_v28 = vld [vmem:[#allocation8 + $0x10] sm:$0xff] }
  0x64   :  { %518 = vmatpush.msra.mxu3 %v236_v31  ;;  %478 = vmatpush.msra.mxu0 %v172_v34  ;;  %v576_v29 = vld [vmem:[#allocation8 + $0x8] sm:$0xff]  ;;  %v575_v30 = vld [vmem:[#allocation8] sm:$0xff]  ;;  %v606_v31 = vld [vmem:[#allocation8 + $0xf8] sm:$0xff] }
  0x65   :  { %537 = vmatpush.msrb.mxu2 %v270_v32  ;;  %498 = vmatpush.msra.mxu1 %v204_v37  ;;  %v605_v32 = vld [vmem:[#allocation8 + $0xf0] sm:$0xff]  ;;  %v283_v33 = vld [vmem:[#allocation7] sm:$0x3]  ;;  %v604_v34 = vld [vmem:[#allocation8 + $0xe8] sm:$0xff] }
  0x66   :  { %519 = vmatpush.msra.mxu3 %v234_v35  ;;  %479 = vmatpush.msra.mxu0 %v170_v38  ;;  %v603_v35 = vld [vmem:[#allocation8 + $0xe0] sm:$0xff]  ;;  %v602_v38 = vld [vmem:[#allocation8 + $0xd8] sm:$0xff] }
  0x67   :  { %538 = vmatpush.msrb.mxu2 %v268_v36  ;;  %499 = vmatpush.msra.mxu1 %v202_v41  ;;  %v285_v36 = vperm.slane %v283_v33, 0 }
  0x68   :  { %520 = vmatpush.msra.mxu3 %v232_v39  ;;  %480 = vmatpush.msra.mxu0 %v168_v42  ;;  %v601_v39 = vld [vmem:[#allocation8 + $0xd0] sm:$0xff]  ;;  %v600_v42 = vld [vmem:[#allocation8 + $0xc8] sm:$0xff] }
  0x69   :  { %539 = vmatpush.msrb.mxu2 %v266_v40  ;;  %500 = vmatpush.msra.mxu1 %v200_v45 }
  0x6a   :  { %521 = vmatpush.msra.mxu3 %v230_v43  ;;  %481 = vmatpush.msra.mxu0 %v166_v46 }
  0x6b   :  { %540 = vmatpush.msrb.mxu2 %v264_v44  ;;  %501 = vmatpush.msra.mxu1 %v198_v49  ;;  %v599_v49 = vld [vmem:[#allocation8 + $0xc0] sm:$0xff] }
  0x6c   :  { %522 = vmatpush.msra.mxu3 %v228_v47  ;;  %482 = vmatpush.msra.mxu0 %v164_v50 }
  0x6d   :  { %541 = vmatpush.msrb.mxu2 %v262_v48  ;;  %502 = vmatpush.msra.mxu1 %v196_v53 }
  0x6e   :  { %523 = vmatpush.msra.mxu3 %v226_v51  ;;  %483 = vmatpush.msra.mxu0 %v162_v54  ;;  %v598_v51 = vld [vmem:[#allocation8 + $0xb8] sm:$0xff] }
  0x6f   :  { %542 = vmatpush.msrb.mxu2 %v260_v52  ;;  %449 = vmatmul.f32.vlgmr.msrb.gmra.mxu3 %v864_v11  ;;  %v188_v11 = vld [vmem:[#allocation5 + $0x328] sm:$0xff] }
  0x70   :  { %524 = vmatpush.msra.mxu3 %v224_v55  ;;  %484 = vmatpush.msra.mxu0 %v160_v57  ;;  %v597_v55 = vld [vmem:[#allocation8 + $0xb0] sm:$0xff]  ;;  %v596_v57 = vld [vmem:[#allocation8 + $0xa8] sm:$0xff] }
  0x71   :  { %543 = vmatpush.msrb.mxu2 %v258_v56  ;;  %503 = vmatpush.msra.mxu1 %v194_v58 }
  0x72   :  { %525 = vmatpush.msra.mxu3 %v222_v59  ;;  %469 = vmatmul.f32.vlgmr.msra.gmra.mxu2 %v871_v18  ;;  %v248_v18 = vld [vmem:[#allocation5 + $0x508] sm:$0xff] }
  0x73   :  { %544 = vmatpush.msrb.mxu2 %v256_v60  ;;  %485 = vmatpush.msra.mxu0 %v158_v61  ;;  %v595_v59 = vld [vmem:[#allocation8 + $0xa0] sm:$0xff]  ;;  %v594_v60 = vld [vmem:[#allocation8 + $0x98] sm:$0xff]  ;;  %v593_v61 = vld [vmem:[#allocation8 + $0x90] sm:$0xff] }
  0x74   :  { %504 = vmatpush.msra.mxu1 %v192_v63  ;;  %526 = vmatpush.msra.mxu3 %v220_v0  ;;  %v592_v63 = vld [vmem:[#allocation8 + $0x88] sm:$0xff]  ;;  %v591_v0 = vld [vmem:[#allocation8 + $0x80] sm:$0xff] }
  0x75   :  { %545 = vmatpush.msrb.mxu2 %v254_v1  ;;  %486 = vmatpush.msra.mxu0 %v156_v2  ;;  %v286_v1 = vperm.slane %v283_v33, 1 }
  0x76   :  { %505 = vmatpush.msra.mxu1 %v190_v4  ;;  %527 = vmatpush.msra.mxu3 %v218_v5 }
  0x77   :  { %546 = vmatpush.msrb.mxu2 %v252_v7  ;;  %487 = vmatpush.msra.mxu0 %v154_v8 }
  0x78   :  { %506 = vmatpush.msra.mxu1 %v188_v11  ;;  %528 = vmatpush.msra.mxu3 %v216_v10 }
  0x79   :  { %547 = vmatpush.msrb.mxu2 %v250_v13  ;;  %529 = vmatmul.f32.vlgmr.msra.gmra.mxu3 %v876_v3  ;;  %v589_v3 = vld [vmem:[#allocation8 + $0x70] sm:$0xff] }
  0x7a   :  { %488 = vmatpush.msra.mxu0 %v152_v14  ;;  %507 = vmatpush.msra.mxu1 %v186_v15 }
  0x7b   :  { %548 = vmatpush.msrb.mxu2 %v248_v18  ;;  %489 = vmatmul.f32.vlgmr.msra.gmra.mxu0 %v862_v6  ;;  %v585_v6 = vld [vmem:[#allocation8 + $0x50] sm:$0xff] }
  0x7c   :  { %549 = vmatmul.f32.vlgmr.msrb.gmra.mxu2 %v881_v9  ;;  %567 = vmatpush.msrb.mxu0 %v282_v16  ;;  %v584_v9 = vld [vmem:[#allocation8 + $0x48] sm:$0xff] }
  0x7d   :  { %508 = vmatpush.msra.mxu1 %v184_v17  ;;  %631 = vmatpush.msrb.mxu3 %v606_v31 }
  0x7e   :  { %509 = vmatmul.f32.vlgmr.msra.gmra.mxu1 %v867_v12  ;;  %568 = vmatpush.msrb.mxu0 %v280_v19  ;;  %v582_v12 = vld [vmem:[#allocation8 + $0x38] sm:$0xff] }
  0x7f   :  { %611 = vmatpush.msrb.mxu1 %v590_v20  ;;  %632 = vmatpush.msrb.mxu3 %v605_v32 }
  0x81   :  { %612 = vmatpush.msrb.mxu1 %v589_v3  ;;  %633 = vmatpush.msrb.mxu3 %v604_v34  ;;  %v682_v3 = vld [vmem:[%s902_s4] ss:$0 sm:$0xff] }
  0x83   :  { %672 = vmatmul.msk.f32.vlgmr.msrb.gmra.mxu0 %vm289_vm0, %v874_v62  ;;  %613 = vmatpush.msrb.mxu1 %v588_v21  ;;  %v580_v62 = vld [vmem:[#allocation8 + $0x28] sm:$0xff] }
  0x84   :  { %634 = vmatpush.msrb.mxu3 %v603_v35 }
  0x85   :  { %614 = vmatpush.msrb.mxu1 %v587_v22 }
  0x86   :  { %635 = vmatpush.msrb.mxu3 %v602_v38 }
  0x87   :  { %615 = vmatpush.msrb.mxu1 %v586_v23 }
  0x88   :  { %636 = vmatpush.msrb.mxu3 %v601_v39 }
  0x89   :  { %616 = vmatpush.msrb.mxu1 %v585_v6 }
  0x8a   :  { %637 = vmatpush.msrb.mxu3 %v600_v42 }
  0x8b   :  { %617 = vmatpush.msrb.mxu1 %v584_v9 }
  0x8c   :  { %638 = vmatpush.msrb.mxu3 %v599_v49 }
  0x8d   :  { %618 = vmatpush.msrb.mxu1 %v583_v24 }
  0x8e   :  { %639 = vmatpush.msrb.mxu3 %v598_v51 }
  0x8f   :  { %619 = vmatpush.msrb.mxu1 %v582_v12 }
  0x90   :  { %640 = vmatpush.msrb.mxu3 %v597_v55 }
  0x91   :  { %620 = vmatpush.msrb.mxu1 %v581_v25 }
  0x92   :  { %641 = vmatpush.msrb.mxu3 %v596_v57 }
  0x93   :  { %621 = vmatpush.msrb.mxu1 %v580_v62 }
  0x94   :  { %642 = vmatpush.msrb.mxu3 %v595_v59 }
  0x95   :  { %622 = vmatpush.msrb.mxu1 %v579_v26 }
  0x96   :  { %643 = vmatpush.msrb.mxu3 %v594_v60 }
  0x97   :  { %623 = vmatpush.msrb.mxu1 %v578_v27 }
  0x98   :  { %644 = vmatpush.msrb.mxu3 %v593_v61 }
  0x99   :  { %624 = vmatpush.msrb.mxu1 %v577_v28 }
  0x9a   :  { %645 = vmatpush.msrb.mxu3 %v592_v63 }
  0x9b   :  { %625 = vmatpush.msrb.mxu1 %v576_v29 }
  0x9c   :  { %646 = vmatpush.msrb.mxu3 %v591_v0 }
  0x9d   :  { %626 = vmatpush.msrb.mxu1 %v575_v30 }
  0xb8   :  { %v310_v37 = vpop.f32.mrf.mxu0 }
  0xb9   :  { %v311_v40 = vadd.f32 %v310_v37, %v285_v36 }
  0xbc   :  { %v330_v41 = vpop.f32.mrf.mxu1  ;;  %v350_v44 = vpop.f32.mrf.mxu2 }
  0xbd   :  { %v331_v43 = vadd.f32 %v330_v41, %v311_v40 }
  0xbf   :  { %v351_v45 = vadd.f32 %v350_v44, %v331_v43  ;;  %v370_v46 = vpop.f32.mrf.mxu3 }
  0xc1   :  { %v371_v47 = vadd.f32 %v370_v46, %v351_v45 }
  0xd4   :  { %v390_v48 = vpop.f32.mrf.mxu0 }
  0xd5   :  { %v391_v50 = vadd.f32 %v390_v48, %v371_v47 }
  0xd7   :  { %v410_v52 = vpop.f32.mrf.mxu1 }
  0xd8   :  { %v411_v53 = vadd.f32 %v410_v52, %v391_v50  ;;  %v430_v54 = vpop.f32.mrf.mxu2 }
  0xda   :  { %v431_v56 = vadd.f32 %v430_v54, %v411_v53 }
  0xdc   :  { %v573_v58 = vmax.f32 %v431_v56, 0.0 }
  0xde   :  { %627 = vmatmul.f32.vlgmr.msrb.gmra.mxu1 %v573_v58 }
  0xf2   :  { %v450_v2 = vpop.f32.mrf.mxu3 }
  0xf3   :  { %v451_v4 = vadd.f32 %v450_v2, %v286_v1 }
  0xf5   :  { %v470_v5 = vpop.f32.mrf.mxu2 }
  0xf6   :  { %v471_v7 = vadd.f32 %v470_v5, %v451_v4 }
  0xf8   :  { %v490_v8 = vpop.f32.mrf.mxu0 }
  0xf9   :  { %v491_v11 = vadd.f32 %v490_v8, %v471_v7 }
  0xfb   :  { %v510_v10 = vpop.f32.mrf.mxu1 }
  0xfc   :  { %v511_v13 = vadd.f32 %v510_v10, %v491_v11  ;;  %v530_v14 = vpop.f32.mrf.mxu3 }
  0xfe   :  { %v531_v15 = vadd.f32 %v530_v14, %v511_v13 }
  0xff   :  { %v550_v18 = vpop.f32.mrf.mxu2 }
 0x100   :  { %v551_v16 = vadd.f32 %v550_v18, %v531_v15  ;;  %v570_v17 = vpop.f32.mrf.mxu0 }
 0x102   :  { %v571_v19 = vadd.f32 %v570_v17, %v551_v16 }
 0x104   :  { %v574_v20 = vmax.f32 %v571_v19, 0.0 }
 0x106   :  { %647 = vmatmul.f32.vlgmr.msrb.gmra.mxu3 %v574_v20 }
 0x15b   :  { %v628_v21 = vpop.f32.mrf.mxu1 }
 0x15c   :  { %v629_v22 = vadd.f32 %v682_v3, %v628_v21 }
 0x189   :  { %v648_v23 = vpop.f32.mrf.mxu3 }
 0x18a   :  { %v649_v6 = vadd.f32 %v648_v23, %v629_v22 }
 0x18c   :  { %651 = vst [vmem:[#allocation10] sm:$0xff] %v649_v6 }
 0x18d   :  { %662 = dma.vmem_to_hbm [thread:$0]  %s658_s16, 128, %s660_s19, [#allocation4]  }
 0x18e   :  { %809 = dma.done.wait [#allocation4], 128  }
 0x18f   :  { %810 = vsyncadd [#allocation4], 4294967168 }
 0x190   :  { %667 = vsyncpa [#allocation3], 1 }
 0x191   :  { %668 = vsyncpa [#allocation6], 1 }
 0x192   :  { %669 = vsyncpa [#allocation9], 1 }
 0x193   :  { %670 = vsyncpa [#allocation4], 1 }

</bundles_post_ra>
